<compile_context>
chip_gen: v7x
topology: tpu7x:2x2x1
jax: 0.10.0
libtpu: 0.0.40
codegen_flags: <defaults>
</compile_context>

<pallas_src>
import functools

import jax
import jax.numpy as jnp
from jax.experimental import pallas as pl
from jax.experimental.pallas import tpu as pltpu


def _receiver_kernel(inp_ref, w_ref, b_ref, x_ref, out_ref, *, compute_dtype):
    """Fused linear -> tanh -> per-batch dot with x, for one (tb, tc) tile."""
    tb, tc, F = inp_ref.shape
    L = w_ref.shape[1]

    # One 2D matmul stream on the MXU: flatten (tb, tc) -> M = tb*tc rows.
    # (Collapse is tile-aligned: tc is a multiple of 8, so no layout shuffle.)
    inp2d = inp_ref[...].reshape(tb * tc, F).astype(compute_dtype)
    w = w_ref[...].astype(compute_dtype)
    emb = jnp.dot(inp2d, w, preferred_element_type=jnp.float32)   # (tb*tc, L) f32

    # Bias + tanh in f32 (v5e has no bf16 VPU/EUP); bias (1, L) broadcasts.
    emb = jnp.tanh(emb + b_ref[...])
    emb = emb.reshape(tb, tc, L)

    # energies = <emb, x> over L: VPU multiply + XLU lane reduce
    # (separate VLIW slots from the EUP tanh -> effectively free).
    x = x_ref[...][:, None, :]                                     # (tb, 1, L)
    energies = jnp.sum(emb * x, axis=-1)                           # (tb, tc)
    out_ref[...] = energies.astype(out_ref.dtype)


def _round_up(n, m):
    return ((n + m - 1) // m) * m


def receiver_forward(x, _input, w, b, *, tc=128, compute_dtype=jnp.bfloat16):
    """x: (B, L); _input: (B, C, F); w: (F, L); b: (L,) -> energies (B, C)."""
    B, C, F = _input.shape
    L = w.shape[1]

    # Pad candidates so the output's last dim is lane-dense (multiple of 128).
    c_pad = _round_up(C, tc)
    if c_pad != C:
        _input = jnp.pad(_input, ((0, 0), (0, c_pad - C), (0, 0)))

    # Batch tile: full B when small, tiles of 8 when B is a larger multiple of 8.
    tb = 8 if (B % 8 == 0 and B > 8) else B

    grid = (B // tb, c_pad // tc)
    kernel = functools.partial(_receiver_kernel, compute_dtype=compute_dtype)

    out = pl.pallas_call(
        kernel,
        out_shape=jax.ShapeDtypeStruct((B, c_pad), jnp.float32),
        grid=grid,
        in_specs=[
            pl.BlockSpec((tb, tc, F), lambda bi, ci: (bi, ci, 0)),   # _input tile
            pl.BlockSpec((F, L), lambda bi, ci: (0, 0)),             # fc1 weight
            pl.BlockSpec((1, L), lambda bi, ci: (0, 0)),             # fc1 bias
            pl.BlockSpec((tb, L), lambda bi, ci: (bi, 0)),           # x (message)
        ],
        out_specs=pl.BlockSpec((tb, tc), lambda bi, ci: (bi, ci)),
        compiler_params=pltpu.CompilerParams(
            dimension_semantics=("parallel", "parallel")),
    )(_input, w, b.reshape(1, L), x)

    return out[:, :C]


def receiver_reference(x, _input, w, b, compute_dtype=jnp.float32):
    """Pure-JAX reference (optionally with the same bf16 MXU operand cast)."""
    emb = jnp.einsum('bcf,fl->bcl',
                     _input.astype(compute_dtype), w.astype(compute_dtype),
                     preferred_element_type=jnp.float32)
    emb = jnp.tanh(emb + b[None, None, :])
    return jnp.einsum('bcl,bl->bc', emb, x)


if __name__ == "__main__":
    # Small shapes consistent with the forward pass:
    #   batch=2, candidates=5 (the `(batch, 5, -1)` convention),
    #   n_features=32, linear_units=64.
    B, C, F, L = 2, 5, 32, 64

    key = jax.random.PRNGKey(0)
    k_in, k_x, k_w, k_b = jax.random.split(key, 4)

    _input = jax.random.normal(k_in, (B, C, F), dtype=jnp.float32)
    x = jax.random.normal(k_x, (B, L), dtype=jnp.float32)
    # Deterministic fc1 params (synthetic init, roughly PyTorch-scaled).
    w = jax.random.normal(k_w, (F, L), dtype=jnp.float32) * (1.0 / jnp.sqrt(F))
    b = jax.random.normal(k_b, (L,), dtype=jnp.float32) * 0.01

    energies = receiver_forward(x, _input, w, b)
    energies = jax.block_until_ready(energies)
    assert energies.shape == (B, C)

    # Tight check vs a reference using the same bf16 MXU operand cast
    # (implementation correctness) + loose check vs a full-f32 reference
    # (semantic fidelity of the bf16 MXU optimization).
    ref_bf16 = receiver_reference(x, _input, w, b, compute_dtype=jnp.bfloat16)
    ref_f32 = receiver_reference(x, _input, w, b, compute_dtype=jnp.float32)
    assert jnp.allclose(energies, ref_bf16, atol=2e-3, rtol=2e-3), \
        "mismatch vs bf16 reference"
    assert jnp.allclose(energies, ref_f32, atol=1e-1, rtol=1e-1), \
        "mismatch vs f32 reference"

    print("KERNEL_OK")
</pallas_src>

<mosaic_0001>
module attributes {stable_mosaic.version = 11 : i64} {
  func.func @_receiver_kernel(%arg0: i32, %arg1: i32, %arg2: memref<2x128x32xf32, #tpu.memory_space<vmem>>, %arg3: memref<32x64xf32, #tpu.memory_space<vmem>>, %arg4: memref<1x64xf32, #tpu.memory_space<vmem>>, %arg5: memref<2x64xf32, #tpu.memory_space<vmem>>, %arg6: memref<2x128xf32, #tpu.memory_space<vmem>>) attributes {dimension_semantics = [#tpu.dimension_semantics<parallel>, #tpu.dimension_semantics<parallel>], iteration_bounds = array<i64: 1, 1>, scalar_prefetch = 0 : i64, scratch_operands = 0 : i64, tpu.core_type = #tpu.core_type<tc>, window_params = [{transform_indices = @transform_0, window_bounds = array<i64: 2, 128, 32>}, {pipeline_mode = #tpu.pipeline_mode<synchronous>, transform_indices = @transform_1, window_bounds = array<i64: 32, 64>}, {pipeline_mode = #tpu.pipeline_mode<synchronous>, transform_indices = @transform_2, window_bounds = array<i64: 1, 64>}, {transform_indices = @transform_3, window_bounds = array<i64: 2, 64>}, {transform_indices = @transform_4, window_bounds = array<i64: 2, 128>}]} {
    %c0 = arith.constant 0 : index
    %c0_0 = arith.constant 0 : index
    %c0_1 = arith.constant 0 : index
    %0 = vector.load %arg2[%c0, %c0_0, %c0_1] : memref<2x128x32xf32, #tpu.memory_space<vmem>>, vector<2x128x32xf32>
    %1 = vector.shape_cast %0 : vector<2x128x32xf32> to vector<256x32xf32>
    %2 = arith.truncf %1 : vector<256x32xf32> to vector<256x32xbf16>
    %c0_2 = arith.constant 0 : index
    %c0_3 = arith.constant 0 : index
    %3 = vector.load %arg3[%c0_2, %c0_3] : memref<32x64xf32, #tpu.memory_space<vmem>>, vector<32x64xf32>
    %4 = arith.truncf %3 : vector<32x64xf32> to vector<32x64xbf16>
    %cst = arith.constant dense<0.000000e+00> : vector<256x64xf32>
    %5 = tpu.matmul %2, %4, %cst {dimension_numbers = #tpu.dot_dimension_numbers<[1], [0], [0], [1], [0, 0, 1, 1], [], []>} : vector<256x32xbf16>, vector<32x64xbf16>, vector<256x64xf32> -> vector<256x64xf32>
    %c0_4 = arith.constant 0 : index
    %c0_5 = arith.constant 0 : index
    %6 = vector.load %arg4[%c0_4, %c0_5] : memref<1x64xf32, #tpu.memory_space<vmem>>, vector<1x64xf32>
    %7 = vector.broadcast %6 : vector<1x64xf32> to vector<256x64xf32>
    %8 = arith.addf %5, %7 : vector<256x64xf32>
    %9 = math.tanh %8 : vector<256x64xf32>
    %10 = vector.shape_cast %9 : vector<256x64xf32> to vector<2x128x64xf32>
    %c0_6 = arith.constant 0 : index
    %c0_7 = arith.constant 0 : index
    %11 = vector.load %arg5[%c0_6, %c0_7] : memref<2x64xf32, #tpu.memory_space<vmem>>, vector<2x64xf32>
    %12 = vector.shape_cast %11 : vector<2x64xf32> to vector<2x1x64xf32>
    %13 = vector.broadcast %12 : vector<2x1x64xf32> to vector<2x128x64xf32>
    %14 = arith.mulf %10, %13 : vector<2x128x64xf32>
    %cst_8 = arith.constant dense<0.000000e+00> : vector<2x128xf32>
    %15 = vector.multi_reduction <add>, %14, %cst_8 [2] : vector<2x128x64xf32> to vector<2x128xf32>
    %c0_9 = arith.constant 0 : index
    %c0_10 = arith.constant 0 : index
    %16 = vector.load %arg6[%c0_9, %c0_10] : memref<2x128xf32, #tpu.memory_space<vmem>>, vector<2x128xf32>
    tpu.vector_store %arg6[%c0_9, %c0_10], %15 {strides = array<i32>} : memref<2x128xf32, #tpu.memory_space<vmem>>, vector<2x128xf32>,
    return
  }
  func.func @transform_0(%arg0: i32, %arg1: i32) -> (i32, i32, i32) {
    %c0_i32 = arith.constant 0 : i32
    %c0_i32_0 = arith.constant 0 : i32
    return %arg0, %arg1, %c0_i32 : i32, i32, i32
  }
  func.func @transform_1(%arg0: i32, %arg1: i32) -> (i32, i32) {
    %c0_i32 = arith.constant 0 : i32
    %c0_i32_0 = arith.constant 0 : i32
    %c0_i32_1 = arith.constant 0 : i32
    return %c0_i32, %c0_i32_0 : i32, i32
  }
  func.func @transform_2(%arg0: i32, %arg1: i32) -> (i32, i32) {
    %c0_i32 = arith.constant 0 : i32
    %c0_i32_0 = arith.constant 0 : i32
    %c0_i32_1 = arith.constant 0 : i32
    return %c0_i32, %c0_i32_0 : i32, i32
  }
  func.func @transform_3(%arg0: i32, %arg1: i32) -> (i32, i32) {
    %c0_i32 = arith.constant 0 : i32
    %c0_i32_0 = arith.constant 0 : i32
    return %arg0, %c0_i32 : i32, i32
  }
  func.func @transform_4(%arg0: i32, %arg1: i32) -> (i32, i32) {
    %c0_i32 = arith.constant 0 : i32
    return %arg0, %arg1 : i32, i32
  }
}

</mosaic_0001>

<bundles_post_ra>
// kernel: tpu_custom_call.1
= control target key start
LH: loop header
LB: loop body
LE: loop exit
PB: predicated region body
PF: predicated region fallthrough
CT: control target
= control target key end

     0   :  { %vm80_vm0 = vcmask 261120   ;;  %s1262_s0 = inlined_call_operand.vmem [shape: f32[2,128,32], index: 0, kind: input, shape index: {}]   ;;  %s1263_s1 = inlined_call_operand.vmem [shape: f32[32,64], index: 1, kind: input, shape index: {}]   ;;  %s1264_s2 = inlined_call_operand.vmem [shape: f32[1,64], index: 2, kind: input, shape index: {}]   ;;  %s1265_s3 = inlined_call_operand.vmem [shape: f32[2,64], index: 3, kind: input, shape index: {}]   ;;  %s1266_s4 = inlined_call_operand.hbm [shape: f32[2,128], index: 4, kind: output, shape index: {}]  }
   0x1   :  { %v67_v0 = vld [vmem:[%s1263_s1] sm:$0xff]  ;;  %v68_v1 = vld [vmem:[%s1263_s1 + $0x8] sm:$0xff]  ;;  %v69_v2 = vld [vmem:[%s1263_s1 + $0x10] sm:$0xff] }
   0x2   :  { %v71_v3 = vpack.c.bf16 %v68_v1, %v67_v0  ;;  %v70_v4 = vld [vmem:[%s1263_s1 + $0x18] sm:$0xff]  ;;  %v19_v5 = vld [vmem:[%s1262_s0] sm:$0xff]  ;;  %v20_v6 = vld [vmem:[%s1262_s0 + $0x8] sm:$0xff] }
   0x3   :  { %v72_v7 = vpack.c.bf16 %v70_v4, %v69_v2  ;;  %v51_v8 = vpack.c.bf16 %v20_v6, %v19_v5  ;;  %v35_v9 = vld [vmem:[%s1262_s0 + $0x80] sm:$0xff]  ;;  %v36_v10 = vld [vmem:[%s1262_s0 + $0x88] sm:$0xff]  ;;  %v21_v12 = vld [vmem:[%s1262_s0 + $0x10] sm:$0xff] }
   0x4   :  { %761 = vmatprep.subr.bf16.mxu0 %v71_v3  ;;  %797 = vmatprep.subr.bf16.mxu1 %v71_v3  ;;  %v59_v11 = vpack.c.bf16 %v36_v10, %v35_v9  ;;  %v22_v13 = vld [vmem:[%s1262_s0 + $0x18] sm:$0xff]  ;;  %v37_v14 = vld [vmem:[%s1262_s0 + $0x90] sm:$0xff]  ;;  %v23_v16 = vld [vmem:[%s1262_s0 + $0x20] sm:$0xff] }
   0x5   :  { %762 = vmatpush3.bf16.msra.mxu0 %v71_v3  ;;  %799 = vmatpush3.bf16.msra.mxu1 %v71_v3  ;;  %v38_v15 = vld [vmem:[%s1262_s0 + $0x98] sm:$0xff]  ;;  %v24_v17 = vld [vmem:[%s1262_s0 + $0x28] sm:$0xff]  ;;  %v39_v18 = vld [vmem:[%s1262_s0 + $0xa0] sm:$0xff]  ;;  %v52_v20 = vpack.c.bf16 %v22_v13, %v21_v12 }
   0x6   :  { %763 = vmatprep.subr.bf16.mxu0 %v72_v7  ;;  %798 = vmatprep.subr.bf16.mxu1 %v72_v7  ;;  %v40_v19 = vld [vmem:[%s1262_s0 + $0xa8] sm:$0xff]  ;;  %v60_v21 = vpack.c.bf16 %v38_v15, %v37_v14  ;;  %v53_v22 = vpack.c.bf16 %v24_v17, %v23_v16  ;;  %v25_v24 = vld [vmem:[%s1262_s0 + $0x30] sm:$0xff]  ;;  %v26_v25 = vld [vmem:[%s1262_s0 + $0x38] sm:$0xff] }
   0x7   :  { %765 = vmatprep.mubr.msk.bf16.mxu0 %vm80_vm0, %v51_v8  ;;  %781 = vmatprep.mubr.msk.bf16.mxu1 %vm80_vm0, %v59_v11  ;;  %v61_v23 = vpack.c.bf16 %v40_v19, %v39_v18  ;;  %v41_v26 = vld [vmem:[%s1262_s0 + $0xb0] sm:$0xff]  ;;  %v42_v27 = vld [vmem:[%s1262_s0 + $0xb8] sm:$0xff]  ;;  %v27_v28 = vld [vmem:[%s1262_s0 + $0x40] sm:$0xff] }
   0x9   :  { %764 = vmatpush3.bf16.msra.mxu0 %v72_v7  ;;  %800 = vmatpush3.bf16.msra.mxu1 %v72_v7 }
   0xc   :  { %766 = vmatmul.mubr.msk.bf16.vlgmr.msra.gmra.mrb[0].mxu0 %vm80_vm0, %v52_v20  ;;  %782 = vmatmul.mubr.msk.bf16.vlgmr.msra.gmra.mrb[0].mxu1 %vm80_vm0, %v60_v21 }
   0xd   :  { %769 = vmatprep.mubr.msk.bf16.mxu0 %vm80_vm0, %v53_v22  ;;  %785 = vmatprep.mubr.msk.bf16.mxu1 %vm80_vm0, %v61_v23 }
   0xe   :  { %9 = vsyncpa [#allocation3], 0  ;;  %v28_v29 = vld [vmem:[%s1262_s0 + $0x48] sm:$0xff]  ;;  %v43_v30 = vld [vmem:[%s1262_s0 + $0xc0] sm:$0xff]  ;;  %v54_v32 = vpack.c.bf16 %v26_v25, %v25_v24  ;;  %v62_v33 = vpack.c.bf16 %v42_v27, %v41_v26  ;;  %v891_v54 = vmov 1966171168   ;;  %v335_v56 = vlaneseq }
   0xf   :  { %v44_v31 = vld [vmem:[%s1262_s0 + $0xc8] sm:$0xff]  ;;  %v55_v34 = vpack.c.bf16 %v28_v29, %v27_v28  ;;  %v29_v36 = vld [vmem:[%s1262_s0 + $0x50] sm:$0xff]  ;;  %v30_v37 = vld [vmem:[%s1262_s0 + $0x58] sm:$0xff]  ;;  %v333_v55 = vunpack.c.l.s4 %v891_v54  ;;  %vm388_vm1 = vcmask 523264   ;;  %vm528_vm2 = vcmask 130112  }
  0x10   :  { %v63_v35 = vpack.c.bf16 %v44_v31, %v43_v30  ;;  %v45_v38 = vld [vmem:[%s1262_s0 + $0xd0] sm:$0xff]  ;;  %v46_v39 = vld [vmem:[%s1262_s0 + $0xd8] sm:$0xff]  ;;  %v31_v40 = vld [vmem:[%s1262_s0 + $0x60] sm:$0xff]  ;;  %v56_v44 = vpack.c.bf16 %v30_v37, %v29_v36  ;;  %v1048_v59 = vshrl.u32 %v335_v56, 7  ;;  %vm535_vm3 = vcmask 195712  }
  0x11   :  { %v32_v41 = vld [vmem:[%s1262_s0 + $0x68] sm:$0xff]  ;;  %v47_v42 = vld [vmem:[%s1262_s0 + $0xe0] sm:$0xff]  ;;  %v64_v45 = vpack.c.bf16 %v46_v39, %v45_v38  ;;  %v33_v48 = vld [vmem:[%s1262_s0 + $0x70] sm:$0xff]  ;;  %v334_v58 = vunpack.c.0.s8 %v333_v55  ;;  %vm542_vm4 = vcmask 261312   ;;  %vm549_vm5 = vcmask 326912  }
  0x12   :  { %v48_v43 = vld [vmem:[%s1262_s0 + $0xe8] sm:$0xff]  ;;  %v57_v46 = vpack.c.bf16 %v32_v41, %v31_v40  ;;  %v34_v49 = vld [vmem:[%s1262_s0 + $0x78] sm:$0xff]  ;;  %v49_v50 = vld [vmem:[%s1262_s0 + $0xf0] sm:$0xff]  ;;  %v348_v13 = vsub.s32 0, %v1048_v59  ;;  %vm556_vm6 = vcmask 392512   ;;  %vm563_vm7 = vcmask 458112  }
  0x13   :  { %v65_v47 = vpack.c.bf16 %v48_v43, %v47_v42  ;;  %v50_v51 = vld [vmem:[%s1262_s0 + $0xf8] sm:$0xff]  ;;  %v58_v52 = vpack.c.bf16 %v34_v49, %v33_v48  ;;  %v1045_v57 = vld [vmem:[%s1264_s2] ss:$0 sm:$0xff]  ;;  %v337_v7 = vsub.s32 %v334_v58, %v1048_v59  ;;  %vm570_vm8 = vcmask 523712   ;;  %s892_s2 = smov [#allocation2]  }
  0x14   :  { %770 = vmatmul.mubr.msk.bf16.gmra.mrb[4].mxu0 %vm80_vm0, %v54_v32  ;;  %786 = vmatmul.mubr.msk.bf16.gmra.mrb[4].mxu1 %vm80_vm0, %v62_v33  ;;  %v66_v53 = vpack.c.bf16 %v50_v51, %v49_v50  ;;  %v742_v62 = vld.sshfl [vmem:[%s1265_s3] sm:$0x11 pattern:$0x75316420]  ;;  %vm577_vm9 = vcmask 589312   ;;  %vm584_vm10 = vcmask 654912  }
  0x15   :  { %773 = vmatprep.mubr.msk.bf16.mxu0 %vm80_vm0, %v55_v34  ;;  %789 = vmatprep.mubr.msk.bf16.mxu1 %vm80_vm0, %v63_v35  ;;  %v331_v11 = vcombine.high %v742_v62, %v742_v62  ;;  %v338_v14 = vrot.slane %v742_v62, %v337_v7  ;;  %vm591_vm11 = vcmask 720512   ;;  %vm598_vm12 = vcmask 786112   ;;  %s717_s3 = sshll.u32 %s892_s2, 4  ;;  %s718_s3 = int_to_ptr.vmem [resolvable:$true] %s717_s3 }
  0x16   :  { %vm605_vm13 = vcmask 851712   ;;  %vm612_vm14 = vcmask 917312   ;;  %vm619_vm15 = vcmask 982912   ;;  %s867_s9 = scalar_lea.vmem %s718_s3, 32  ;;  %p872_p1 = scmp.lt.s32.totalorder %s718_s3, %s718_s3 }
  0x17   :  { %v345_v16 = vrot.slane %v331_v11, %v337_v7  ;;  %v1065_v26 = vrot.slane %v338_v14, %v348_v13  ;;  %p868_p0 = scmp.ne.s32.totalorder %s718_s3, %s867_s9  ;;  %p873_p2 = scmp.lt.s32.totalorder %s867_s9, %s867_s9 }
  0x19   :  { %v1067_v29 = vrot.slane %v345_v16, %v348_v13  ;;  %p874_p3 = por %p873_p2, %p872_p1 }
  0x1b   :  { %p875_p4 = pnand %p874_p3, %p868_p0 }
  0x1c   :  { %774 = vmatmul.mubr.msk.bf16.gmra.mrb[8].mxu0 %vm80_vm0, %v56_v44  ;;  %790 = vmatmul.mubr.msk.bf16.gmra.mrb[8].mxu1 %vm80_vm0, %v64_v45 }
  0x1d   :  { %777 = vmatprep.mubr.msk.bf16.mxu0 %vm80_vm0, %v57_v46  ;;  %793 = vmatprep.mubr.msk.bf16.mxu1 %vm80_vm0, %v65_v47 }
  0x24   :  { %778 = vmatmul.mubr.msk.bf16.gmra.mrb[12].mxu0 %vm80_vm0, %v58_v52  ;;  %794 = vmatmul.mubr.msk.bf16.gmra.mrb[12].mxu1 %vm80_vm0, %v66_v53  ;;  %vm626_vm0 = vcmask 1048512  }
  0xdf   :  { %v767_v60 = vpop.f32.mrb[0].mxu0  ;;  %v783_v61 = vpop.f32.mrb[0].mxu1 }
  0xe0   :  { %v172_v63 = vadd.f32 %v767_v60, %v1045_v57  ;;  %v236_v0 = vadd.f32 %v783_v61, %v1045_v57  ;;  %v163_v1 = vpop.f32.mrb[1].mxu0  ;;  %v227_v2 = vpop.f32.mrb[1].mxu1 }
  0xe1   :  { %v164_v3 = vadd.f32 %v1045_v57, %v163_v1  ;;  %v228_v4 = vadd.f32 %v1045_v57, %v227_v2  ;;  %v768_v5 = vpop.f32.mrb[2].mxu0  ;;  %v784_v6 = vpop.f32.mrb[2].mxu1 }
  0xe2   :  { %803 = vtanh.f32 %v172_v63  ;;  %v175_v8 = vadd.f32 %v768_v5, %v1045_v57  ;;  %v166_v9 = vpop.f32.mrb[3].mxu0  ;;  %v230_v10 = vpop.f32.mrb[3].mxu1  ;;  %v239_v12 = vadd.f32 %v784_v6, %v1045_v57 }
  0xe3   :  { %805 = vtanh.f32 %v236_v0  ;;  %v167_v15 = vadd.f32 %v1045_v57, %v166_v9  ;;  %v231_v17 = vadd.f32 %v1045_v57, %v230_v10 }
  0xe4   :  { %807 = vtanh.f32 %v164_v3 }
  0xe5   :  { %809 = vtanh.f32 %v228_v4 }
  0xe6   :  { %811 = vtanh.f32 %v175_v8 }
  0xe7   :  { %813 = vtanh.f32 %v239_v12  ;;  %v771_v18 = vpop.f32.mrb[4].mxu0  ;;  %v787_v19 = vpop.f32.mrb[4].mxu1 }
  0xe8   :  { %v188_v20 = vadd.f32 %v771_v18, %v1045_v57  ;;  %v179_v21 = vpop.f32.mrb[5].mxu0  ;;  %v243_v22 = vpop.f32.mrb[5].mxu1  ;;  %v252_v23 = vadd.f32 %v787_v19, %v1045_v57  ;;  %815 = vtanh.f32 %v167_v15 }
  0xe9   :  { %v772_v24 = vpop.f32.mrb[6].mxu0  ;;  %v788_v25 = vpop.f32.mrb[6].mxu1  ;;  %817 = vtanh.f32 %v231_v17  ;;  %v180_v34 = vadd.f32 %v1045_v57, %v179_v21  ;;  %v244_v37 = vadd.f32 %v1045_v57, %v243_v22 }
  0xea   :  { %v182_v27 = vpop.f32.mrb[7].mxu0  ;;  %v246_v28 = vpop.f32.mrb[7].mxu1  ;;  %819 = vtanh.f32 %v188_v20  ;;  %v191_v50 = vadd.f32 %v772_v24, %v1045_v57  ;;  %v255_v53 = vadd.f32 %v788_v25, %v1045_v57 }
  0xeb   :  { %821 = vtanh.f32 %v252_v23  ;;  %v183_v0 = vadd.f32 %v1045_v57, %v182_v27  ;;  %v247_v2 = vadd.f32 %v1045_v57, %v246_v28 }
  0xec   :  { %v804_v30 = vpop.eup %803  ;;  %823 = vtanh.f32 %v180_v34 }
  0xed   :  { %v806_v31 = vpop.eup %805  ;;  %v358_v32 = vmul.f32 %v804_v30, %v1065_v26  ;;  %825 = vtanh.f32 %v244_v37 }
  0xee   :  { %v808_v33 = vpop.eup %807  ;;  %v374_v35 = vmul.f32 %v806_v31, %v1067_v29  ;;  %827 = vtanh.f32 %v191_v50 }
  0xef   :  { %v810_v36 = vpop.eup %809  ;;  %v395_v38 = vsel %vm388_vm1, %v358_v32, 0.0  ;;  %v356_v39 = vmul.f32 %v808_v33, %v1065_v26  ;;  %v791_v40 = vpop.f32.mrb[8].mxu1  ;;  %829 = vtanh.f32 %v255_v53 }
  0xf0   :  { %v775_v41 = vpop.f32.mrb[8].mxu0  ;;  %v812_v42 = vpop.eup %811  ;;  %v443_v43 = vsel %vm388_vm1, %v374_v35, 0.0  ;;  %396 = vadd.xlane.f32.xlu0 %v395_v38  ;;  %v372_v44 = vmul.f32 %v810_v36, %v1067_v29  ;;  %v268_v12 = vadd.f32 %v791_v40, %v1045_v57  ;;  %831 = vtanh.f32 %v183_v0 }
  0xf1   :  { %v195_v45 = vpop.f32.mrb[9].mxu0  ;;  %v259_v46 = vpop.f32.mrb[9].mxu1  ;;  %444 = vadd.xlane.f32.xlu1 %v443_v43  ;;  %v389_v54 = vsel %vm388_vm1, %v356_v39, 0.0  ;;  %v359_v55 = vmul.f32 %v812_v42, %v1065_v26  ;;  %v204_v9 = vadd.f32 %v775_v41, %v1045_v57  ;;  %833 = vtanh.f32 %v247_v2 }
  0xf2   :  { %v814_v47 = vpop.eup %813  ;;  %v776_v48 = vpop.f32.mrb[10].mxu0  ;;  %v437_v60 = vsel %vm388_vm1, %v372_v44, 0.0  ;;  %v196_v24 = vadd.f32 %v1045_v57, %v195_v45  ;;  %v260_v27 = vadd.f32 %v1045_v57, %v259_v46 }
  0xf3   :  { %v792_v49 = vpop.f32.mrb[10].mxu1  ;;  %v1078_v51 = vpop.f32.mrb[11].mxu0  ;;  %v375_v61 = vmul.f32 %v814_v47, %v1067_v29  ;;  %v398_v3 = vsel %vm388_vm1, %v359_v55, 0.0  ;;  %835 = vtanh.f32 %v204_v9  ;;  %v207_v33 = vadd.f32 %v776_v48, %v1045_v57 }
  0xf4   :  { %v1080_v52 = vpop.f32.mrb[11].mxu1  ;;  %v816_v58 = vpop.eup %815  ;;  %390 = vadd.xlane.f32.xlu0 %v389_v54  ;;  %837 = vtanh.f32 %v268_v12  ;;  %v271_v34 = vadd.f32 %v792_v49, %v1045_v57  ;;  %v199_v42 = vadd.f32 %v1045_v57, %v1078_v51 }
  0xf5   :  { %v818_v62 = vpop.eup %817  ;;  %438 = vadd.xlane.f32.xlu1 %v437_v60  ;;  %v357_v4 = vmul.f32 %v816_v58, %v1065_v26  ;;  %v446_v7 = vsel %vm388_vm1, %v375_v61, 0.0  ;;  %839 = vtanh.f32 %v196_v24  ;;  %v263_v44 = vadd.f32 %v1045_v57, %v1080_v52 }
  0xf6   :  { %v820_v63 = vpop.eup %819  ;;  %v373_v8 = vmul.f32 %v818_v62, %v1067_v29  ;;  %841 = vtanh.f32 %v260_v27 }
  0xf7   :  { %v822_v1 = vpop.eup %821  ;;  %v795_v5 = vpop.f32.mrb[12].mxu1  ;;  %v362_v13 = vmul.f32 %v820_v63, %v1065_v26  ;;  %v392_v19 = vsel %vm388_vm1, %v357_v4, 0.0  ;;  %843 = vtanh.f32 %v207_v33 }
  0xf8   :  { %v779_v6 = vpop.f32.mrb[12].mxu0  ;;  %399 = vadd.xlane.f32.xlu0 %v398_v3  ;;  %v1096_v11 = vpop.f32.mrb[13].mxu1  ;;  %v378_v16 = vmul.f32 %v822_v1, %v1067_v29  ;;  %v440_v21 = vsel %vm388_vm1, %v373_v8, 0.0  ;;  %845 = vtanh.f32 %v271_v34  ;;  %v284_v50 = vadd.f32 %v795_v5, %v1045_v57 }
  0xf9   :  { %v1094_v10 = vpop.f32.mrb[13].mxu0  ;;  %447 = vadd.xlane.f32.xlu1 %v446_v7  ;;  %v1102_v15 = vpop.f32.mrb[14].mxu1  ;;  %v407_v23 = vsel %vm388_vm1, %v362_v13, 0.0  ;;  %v220_v49 = vadd.f32 %v779_v6, %v1045_v57  ;;  %847 = vtanh.f32 %v199_v42  ;;  %v276_v63 = vadd.f32 %v1045_v57, %v1096_v11 }
  0xfa   :  { %v1100_v14 = vpop.f32.mrb[14].mxu0  ;;  %v1107_v18 = vpop.f32.mrb[15].mxu1  ;;  %v455_v25 = vsel %vm388_vm1, %v378_v16, 0.0  ;;  %849 = vtanh.f32 %v263_v44  ;;  %v212_v61 = vadd.f32 %v1045_v57, %v1094_v10 }
  0xfb   :  { %v1105_v17 = vpop.f32.mrb[15].mxu0  ;;  %v824_v20 = vpop.eup %823  ;;  %851 = vtanh.f32 %v220_v49  ;;  %v279_v5 = vadd.f32 %v1045_v57, %v1107_v18  ;;  %v223_v13 = vadd.f32 %v1100_v14, %v1045_v57 }
  0xfc   :  { %393 = vadd.xlane.f32.xlu0 %v392_v19  ;;  %v826_v22 = vpop.eup %825  ;;  %v360_v28 = vmul.f32 %v824_v20, %v1065_v26  ;;  %853 = vtanh.f32 %v284_v50  ;;  %v215_v4 = vadd.f32 %v1045_v57, %v1105_v17  ;;  %v287_v17 = vadd.f32 %v1102_v15, %v1045_v57 }
  0xfd   :  { %441 = vadd.xlane.f32.xlu1 %v440_v21  ;;  %v828_v30 = vpop.eup %827  ;;  %v376_v31 = vmul.f32 %v826_v22, %v1067_v29  ;;  %855 = vtanh.f32 %v212_v61 }
  0xfe   :  { %v830_v32 = vpop.eup %829  ;;  %v401_v35 = vsel %vm388_vm1, %v360_v28, 0.0  ;;  %v363_v36 = vmul.f32 %v828_v30, %v1065_v26  ;;  %857 = vtanh.f32 %v276_v63 }
  0xff   :  { %v832_v37 = vpop.eup %831  ;;  %v449_v38 = vsel %vm388_vm1, %v376_v31, 0.0  ;;  %v379_v39 = vmul.f32 %v830_v32, %v1067_v29  ;;  %859 = vtanh.f32 %v215_v4 }
 0x100   :  { %408 = vadd.xlane.f32.xlu0 %v407_v23  ;;  %v834_v40 = vpop.eup %833  ;;  %v410_v45 = vsel %vm388_vm1, %v363_v36, 0.0  ;;  %v361_v46 = vmul.f32 %v832_v37, %v1065_v26  ;;  %861 = vtanh.f32 %v279_v5 }
 0x101   :  { %456 = vadd.xlane.f32.xlu1 %v455_v25  ;;  %v836_v41 = vpop.eup %835  ;;  %v458_v47 = vsel %vm388_vm1, %v379_v39, 0.0  ;;  %v377_v48 = vmul.f32 %v834_v40, %v1067_v29  ;;  %863 = vtanh.f32 %v223_v13 }
 0x102   :  { %v838_v43 = vpop.eup %837  ;;  %v366_v51 = vmul.f32 %v836_v41, %v1065_v26  ;;  %v404_v52 = vsel %vm388_vm1, %v361_v46, 0.0  ;;  %865 = vtanh.f32 %v287_v17 }
 0x103   :  { %v382_v53 = vmul.f32 %v838_v43, %v1067_v29  ;;  %v840_v54 = vpop.eup %839  ;;  %v452_v55 = vsel %vm388_vm1, %v377_v48, 0.0 }
 0x104   :  { %402 = vadd.xlane.f32.xlu0 %v401_v35  ;;  %v842_v58 = vpop.eup %841  ;;  %v419_v60 = vsel %vm388_vm1, %v366_v51, 0.0  ;;  %v364_v0 = vmul.f32 %v840_v54, %v1065_v26  ;;  %v1184_v54 = vand.u32 127, %v335_v56 }
 0x105   :  { %450 = vadd.xlane.f32.xlu1 %v449_v38  ;;  %v467_v62 = vsel %vm388_vm1, %v382_v53, 0.0  ;;  %v844_v1 = vpop.eup %843  ;;  %v380_v2 = vmul.f32 %v842_v58, %v1067_v29 }
 0x106   :  { %v846_v3 = vpop.eup %845  ;;  %v413_v6 = vsel %vm388_vm1, %v364_v0, 0.0  ;;  %v367_v7 = vmul.f32 %v844_v1, %v1065_v26  ;;  %v523_v58 = vadd.s32 4294967288, %v1184_v54  ;;  %v530_v63 = vadd.s32 4294967280, %v1184_v54 }
 0x107   :  { %v848_v8 = vpop.eup %847  ;;  %v461_v9 = vsel %vm388_vm1, %v380_v2, 0.0  ;;  %v383_v10 = vmul.f32 %v846_v3, %v1067_v29  ;;  %v521_v1 = vsub.s32 %v1184_v54, %v1048_v59  ;;  %v544_v3 = vadd.s32 4294967264, %v1184_v54 }
 0x108   :  { %411 = vadd.xlane.f32.xlu0 %v410_v45  ;;  %v850_v11 = vpop.eup %849  ;;  %v422_v18 = vsel %vm388_vm1, %v367_v7, 0.0  ;;  %v365_v19 = vmul.f32 %v848_v8, %v1065_v26  ;;  %v537_v56 = vadd.s32 4294967272, %v1184_v54  ;;  %v551_v5 = vadd.s32 4294967256, %v1184_v54 }
 0x109   :  { %459 = vadd.xlane.f32.xlu1 %v458_v47  ;;  %v852_v12 = vpop.eup %851  ;;  %v470_v20 = vsel %vm388_vm1, %v383_v10, 0.0  ;;  %v381_v21 = vmul.f32 %v850_v11, %v1067_v29 }
 0x10a   :  { %v854_v16 = vpop.eup %853  ;;  %v370_v22 = vmul.f32 %v852_v12, %v1065_v26  ;;  %v416_v23 = vsel %vm388_vm1, %v365_v19, 0.0  ;;  %v547_v12 = vsub.s32 %v544_v3, %v1048_v59  ;;  %v540_v13 = vsub.s32 %v537_v56, %v1048_v59 }
 0x10b   :  { %v386_v14 = vmul.f32 %v854_v16, %v1067_v29  ;;  %v856_v57 = vpop.eup %855  ;;  %v464_v15 = vsel %vm388_vm1, %v381_v21, 0.0  ;;  %v554_v17 = vsub.s32 %v551_v5, %v1048_v59 }
 0x10c   :  { %405 = vadd.xlane.f32.xlu0 %v404_v52  ;;  %v858_v24 = vpop.eup %857  ;;  %v431_v25 = vsel %vm388_vm1, %v370_v22, 0.0  ;;  %v368_v28 = vmul.f32 %v856_v57, %v1065_v26 }
 0x10d   :  { %453 = vadd.xlane.f32.xlu1 %v452_v55  ;;  %v479_v27 = vsel %vm388_vm1, %v386_v14, 0.0  ;;  %v860_v30 = vpop.eup %859  ;;  %v384_v31 = vmul.f32 %v858_v24, %v1067_v29  ;;  %v565_v14 = vadd.s32 4294967240, %v1184_v54  ;;  %v572_v24 = vadd.s32 4294967232, %v1184_v54 }
 0x10e   :  { %v862_v32 = vpop.eup %861  ;;  %v425_v33 = vsel %vm388_vm1, %v368_v28, 0.0  ;;  %v369_v34 = vmul.f32 %v860_v30, %v1065_v26 }
 0x10f   :  { %v864_v35 = vpop.eup %863  ;;  %v473_v36 = vsel %vm388_vm1, %v384_v31, 0.0  ;;  %v385_v37 = vmul.f32 %v862_v32, %v1067_v29 }
 0x110   :  { %420 = vadd.xlane.f32.xlu0 %v419_v60  ;;  %v866_v38 = vpop.eup %865  ;;  %v428_v39 = vsel %vm388_vm1, %v369_v34, 0.0  ;;  %v371_v40 = vmul.f32 %v864_v35, %v1065_v26 }
 0x111   :  { %468 = vadd.xlane.f32.xlu1 %v467_v62  ;;  %v476_v41 = vsel %vm388_vm1, %v385_v37, 0.0  ;;  %v387_v42 = vmul.f32 %v866_v38, %v1067_v29  ;;  %v526_v62 = vsub.s32 %v523_v58, %v1048_v59 }
 0x112   :  { %v434_v43 = vsel %vm388_vm1, %v371_v40, 0.0  ;;  %v568_v40 = vsub.s32 %v565_v14, %v1048_v59 }
 0x113   :  { %v482_v44 = vsel %vm388_vm1, %v387_v42, 0.0  ;;  %vm707_vm1 = vcmask 1041409  }
 0x114   :  { %414 = vadd.xlane.f32.xlu0 %v413_v6  ;;  %v533_v6 = vsub.s32 %v530_v63, %v1048_v59 }
 0x115   :  { %462 = vadd.xlane.f32.xlu1 %v461_v9 }
 0x118   :  { %423 = vadd.xlane.f32.xlu0 %v422_v18 }
 0x119   :  { %471 = vadd.xlane.f32.xlu1 %v470_v20  ;;  %v558_v20 = vadd.s32 4294967248, %v1184_v54 }
 0x11c   :  { %417 = vadd.xlane.f32.xlu0 %v416_v23 }
 0x11d   :  { %465 = vadd.xlane.f32.xlu1 %v464_v15 }
 0x120   :  { %432 = vadd.xlane.f32.xlu0 %v431_v25  ;;  %v579_v25 = vadd.s32 4294967224, %v1184_v54 }
 0x121   :  { %480 = vadd.xlane.f32.xlu1 %v479_v27 }
 0x124   :  { %426 = vadd.xlane.f32.xlu0 %v425_v33  ;;  %v561_v33 = vsub.s32 %v558_v20, %v1048_v59  ;;  %v621_v20 = vadd.s32 4294967176, %v1184_v54 }
 0x125   :  { %474 = vadd.xlane.f32.xlu1 %v473_v36 }
 0x128   :  { %429 = vadd.xlane.f32.xlu0 %v428_v39 }
 0x129   :  { %477 = vadd.xlane.f32.xlu1 %v476_v41  ;;  %v575_v41 = vsub.s32 %v572_v24, %v1048_v59 }
 0x12c   :  { %435 = vadd.xlane.f32.xlu0 %v434_v43 }
 0x12d   :  { %483 = vadd.xlane.f32.xlu1 %v482_v44  ;;  %v582_v44 = vsub.s32 %v579_v25, %v1048_v59 }
 0x17d   :  { %v397_v45 = vpop.xlane.xlu0 %396 }
 0x17e   :  { %v445_v46 = vpop.xlane.xlu1 %444  ;;  %v534_v18 = vrot.slane %v397_v45, %v533_v6 }
 0x17f   :  { %v640_v22 = vrot.slane %v445_v46, %v533_v6 }
 0x181   :  { %v391_v47 = vpop.xlane.xlu0 %390 }
 0x182   :  { %v439_v48 = vpop.xlane.xlu1 %438  ;;  %v522_v9 = vrot.slane %v391_v47, %v521_v1  ;;  %v586_v47 = vadd.s32 4294967216, %v1184_v54 }
 0x183   :  { %v631_v11 = vrot.slane %v439_v48, %v521_v1 }
 0x185   :  { %v400_v49 = vpop.xlane.xlu0 %399 }
 0x186   :  { %v448_v50 = vpop.xlane.xlu1 %447  ;;  %v541_v27 = vrot.slane %v400_v49, %v540_v13 }
 0x187   :  { %v645_v32 = vrot.slane %v448_v50, %v540_v13  ;;  %v614_v13 = vadd.s32 4294967184, %v1184_v54 }
 0x189   :  { %v394_v51 = vpop.xlane.xlu0 %393 }
 0x18a   :  { %v442_v26 = vpop.xlane.xlu1 %441  ;;  %v527_v4 = vrot.slane %v394_v51, %v526_v62 }
 0x18b   :  { %v635_v7 = vrot.slane %v442_v26, %v526_v62 }
 0x18c   :  { %v529_v16 = vsel %vm528_vm2, %v527_v4, %v522_v9  ;;  %v607_v4 = vadd.s32 4294967192, %v1184_v54 }
 0x18d   :  { %v1179_v53 = vpop.xlane.xlu0 %408  ;;  %v636_v19 = vsel %vm528_vm2, %v635_v7, %v631_v11  ;;  %v536_v57 = vsel %vm535_vm3, %v534_v18, %v529_v16 }
 0x18e   :  { %v1181_v52 = vpop.xlane.xlu1 %456  ;;  %v641_v28 = vsel %vm535_vm3, %v640_v22, %v636_v19  ;;  %v543_v36 = vsel %vm542_vm4, %v541_v27, %v536_v57  ;;  %v562_v45 = vrot.slane %v1179_v53, %v561_v33  ;;  %v610_v19 = vsub.s32 %v607_v4, %v1048_v59 }
 0x18f   :  { %v646_v38 = vsel %vm542_vm4, %v645_v32, %v641_v28  ;;  %v660_v49 = vrot.slane %v1181_v52, %v561_v33  ;;  %v589_v52 = vsub.s32 %v586_v47, %v1048_v59  ;;  %v624_v28 = vsub.s32 %v621_v20, %v1048_v59 }
 0x191   :  { %v403_v29 = vpop.xlane.xlu0 %402 }
 0x192   :  { %v451_v55 = vpop.xlane.xlu1 %450  ;;  %v548_v15 = vrot.slane %v403_v29, %v547_v12  ;;  %v593_v29 = vadd.s32 4294967208, %v1184_v54 }
 0x193   :  { %v650_v30 = vrot.slane %v451_v55, %v547_v12  ;;  %v600_v55 = vadd.s32 4294967200, %v1184_v54 }
 0x194   :  { %v550_v39 = vsel %vm549_vm5, %v548_v15, %v543_v36  ;;  %v617_v15 = vsub.s32 %v614_v13, %v1048_v59 }
 0x195   :  { %v1187_v60 = vpop.xlane.xlu0 %411  ;;  %v651_v42 = vsel %vm549_vm5, %v650_v30, %v646_v38  ;;  %v603_v6 = vsub.s32 %v600_v55, %v1048_v59 }
 0x196   :  { %v1189_v61 = vpop.xlane.xlu1 %459  ;;  %v569_v58 = vrot.slane %v1187_v60, %v568_v40 }
 0x199   :  { %v406_v0 = vpop.xlane.xlu0 %405 }
 0x19a   :  { %v454_v2 = vpop.xlane.xlu1 %453  ;;  %v555_v31 = vrot.slane %v406_v0, %v554_v17  ;;  %v665_v0 = vrot.slane %v1189_v61, %v568_v40  ;;  %v596_v61 = vsub.s32 %v593_v29, %v1048_v59 }
 0x19b   :  { %v655_v34 = vrot.slane %v454_v2, %v554_v17 }
 0x19c   :  { %v557_v43 = vsel %vm556_vm6, %v555_v31, %v550_v39 }
 0x19d   :  { %v1199_v8 = vpop.xlane.xlu0 %420  ;;  %v656_v46 = vsel %vm556_vm6, %v655_v34, %v651_v42  ;;  %v564_v51 = vsel %vm563_vm7, %v562_v45, %v557_v43 }
 0x19e   :  { %v1201_v10 = vpop.xlane.xlu1 %468  ;;  %v661_v53 = vsel %vm563_vm7, %v660_v49, %v656_v46  ;;  %v571_v3 = vsel %vm570_vm8, %v569_v58, %v564_v51  ;;  %v590_v11 = vrot.slane %v1199_v8, %v589_v52 }
 0x19f   :  { %v666_v5 = vsel %vm570_vm8, %v665_v0, %v661_v53  ;;  %v680_v17 = vrot.slane %v1201_v10, %v589_v52 }
 0x1a1   :  { %v415_v21 = vpop.xlane.xlu0 %414 }
 0x1a2   :  { %v463_v23 = vpop.xlane.xlu1 %462  ;;  %v576_v26 = vrot.slane %v415_v21, %v575_v41 }
 0x1a3   :  { %v670_v62 = vrot.slane %v463_v23, %v575_v41 }
 0x1a4   :  { %v578_v60 = vsel %vm577_vm9, %v576_v26, %v571_v3 }
 0x1a5   :  { %v1213_v35 = vpop.xlane.xlu0 %423  ;;  %v671_v7 = vsel %vm577_vm9, %v670_v62, %v666_v5 }
 0x1a6   :  { %v1216_v37 = vpop.xlane.xlu1 %471  ;;  %v597_v14 = vrot.slane %v1213_v35, %v596_v61 }
 0x1a7   :  { %v685_v8 = vrot.slane %v1216_v37, %v596_v61 }
 0x1a9   :  { %v418_v48 = vpop.xlane.xlu0 %417 }
 0x1aa   :  { %v466_v50 = vpop.xlane.xlu1 %465  ;;  %v583_v63 = vrot.slane %v418_v48, %v582_v44 }
 0x1ab   :  { %v675_v1 = vrot.slane %v466_v50, %v582_v44 }
 0x1ac   :  { %v585_v9 = vsel %vm584_vm10, %v583_v63, %v578_v60 }
 0x1ad   :  { %v433_v2 = vpop.xlane.xlu0 %432  ;;  %v676_v12 = vsel %vm584_vm10, %v675_v1, %v671_v7  ;;  %v592_v21 = vsel %vm591_vm11, %v590_v11, %v585_v9 }
 0x1ae   :  { %v481_v56 = vpop.xlane.xlu1 %480  ;;  %v681_v23 = vsel %vm591_vm11, %v680_v17, %v676_v12  ;;  %v599_v10 = vsel %vm598_vm12, %v597_v14, %v592_v21  ;;  %v618_v34 = vrot.slane %v433_v2, %v617_v15 }
 0x1af   :  { %v686_v54 = vsel %vm598_vm12, %v685_v8, %v681_v23  ;;  %v700_v37 = vrot.slane %v481_v56, %v617_v15 }
 0x1b1   :  { %v427_v16 = vpop.xlane.xlu0 %426 }
 0x1b2   :  { %v475_v18 = vpop.xlane.xlu1 %474  ;;  %v604_v22 = vrot.slane %v427_v16, %v603_v6 }
 0x1b3   :  { %v690_v57 = vrot.slane %v475_v18, %v603_v6 }
 0x1b4   :  { %v606_v30 = vsel %vm605_vm13, %v604_v22, %v599_v10 }
 0x1b5   :  { %v430_v24 = vpop.xlane.xlu0 %429  ;;  %v691_v32 = vsel %vm605_vm13, %v690_v57, %v686_v54 }
 0x1b6   :  { %v478_v25 = vpop.xlane.xlu1 %477  ;;  %v611_v27 = vrot.slane %v430_v24, %v610_v19 }
 0x1b7   :  { %v695_v31 = vrot.slane %v478_v25, %v610_v19 }
 0x1b8   :  { %v613_v33 = vsel %vm612_vm14, %v611_v27, %v606_v30 }
 0x1b9   :  { %v696_v35 = vsel %vm612_vm14, %v695_v31, %v691_v32  ;;  %v436_v36 = vpop.xlane.xlu0 %435  ;;  %v620_v41 = vsel %vm619_vm15, %v618_v34, %v613_v33 }
 0x1ba   :  { %v484_v38 = vpop.xlane.xlu1 %483  ;;  %v625_v39 = vrot.slane %v436_v36, %v624_v28  ;;  %v701_v59 = vsel %vm619_vm15, %v700_v37, %v696_v35 }
 0x1bb   :  { %v705_v40 = vrot.slane %v484_v38, %v624_v28 }
 0x1bc   :  { %v627_v42 = vsel %vm626_vm0, %v625_v39, %v620_v41 }
 0x1bd   :  { %v706_v43 = vsel %vm626_vm0, %v705_v40, %v701_v59 }
 0x1be   :  { %v708_v44 = vsel %vm707_vm1, %v706_v43, %v627_v42 }
 0x1bf   :  { %710 = vst [vmem:[#allocation2] sm:$0x3] %v708_v44 }
 0x1c0   :  { %878 = shalt.err (!%p875_p4)
}
 0x1c1   :  { %s879_s12 = scalar_lea.hbm %s1266_s4, 32 }
 0x1c2   :  { %p880_p5 = scmp.ne.s32.totalorder %s1266_s4, %s879_s12  ;;  %p883_p6 = scmp.lt.u32.totalorder %s879_s12, %s1266_s4 }
 0x1c4   :  { %p885_p7 = pnand %p883_p6, %p880_p5 }
 0x1c6   :  { %888 = shalt.err (!%p885_p7)
}
 0x1c7   :  { %720 = dma.vmem_to_hbm [thread:$0]  %s718_s3, 32, %s1266_s4, [#allocation3]  }
 0x1c8   :  { %889 = dma.done.wait [#allocation3], 32  }
 0x1c9   :  { %890 = vsyncadd [#allocation3], 4294967264 }
 0x1ca   :  { %724 = vsyncpa [#allocation3], 1 }

</bundles_post_ra>
